<compile_context>
chip_gen: v7x
topology: tpu7x:2x2x1
jax: 0.10.0
libtpu: 0.0.40
codegen_flags: <defaults>
</compile_context>

<pallas_src>
import jax
import jax.numpy as jnp
from jax.experimental import pallas as pl
from jax.experimental.pallas import tpu as pltpu


def _conv_bn_relu_kernel(xp_ref, w_ref, gb_ref, out_ref):
    # xp_ref : (B, C, L_pad)  bf16  -- padded input, channels on sublanes, length on lanes
    # w_ref  : (K, F, C)      bf16  -- conv weight, one (F, C) slab per tap k
    # gb_ref : (F, 2)         f32   -- column 0 = gamma, column 1 = beta
    # out_ref: (B, F, L_out)  f32   -- conv + BN(train) + ReLU
    B = xp_ref.shape[0]
    K, F, _ = w_ref.shape
    L_out = out_ref.shape[-1]
    n = B * L_out

    ys = []
    s1 = jnp.zeros((F, 1), jnp.float32)
    s2 = jnp.zeros((F, 1), jnp.float32)
    for b in range(B):                                  # static unroll (B is small)
        xb = xp_ref[b]                                  # (C, L_pad) load once
        acc = jnp.zeros((F, L_out), jnp.float32)
        for k in range(K):                              # static unroll over kernel taps
            # in-kernel im2col: k-shifted window, contraction over channels on the MXU
            acc += jnp.dot(w_ref[k], xb[:, k:k + L_out],
                           preferred_element_type=jnp.float32)
        ys.append(acc)
        s1 = s1 + jnp.sum(acc, axis=1, keepdims=True)   # lane-axis (XLU) reduce
        s2 = s2 + jnp.sum(acc * acc, axis=1, keepdims=True)

    # BatchNorm2d training mode: per-filter stats over B * 1 * L_out elements,
    # biased variance, eps = 1e-5 (PyTorch default). Conv bias is omitted because
    # the mean subtraction cancels it exactly. Running stats are not tracked.
    inv_n = 1.0 / n
    mean = s1 * inv_n                                   # (F, 1)
    var = s2 * inv_n - mean * mean                      # (F, 1), single-pass variance
    gamma = gb_ref[:, 0:1]
    beta = gb_ref[:, 1:2]
    scale = gamma * jax.lax.rsqrt(var + 1e-5)           # fold gamma into inv-std
    shift = beta - mean * scale                         # fold mean into the shift

    for b in range(B):
        out_ref[b] = jnp.maximum(ys[b] * scale + shift, 0.0)   # one FMA + ReLU per element


def conv_encoder_forward(x, weight, bias, gamma, beta, kernel_size):
    """x: (B, C, L) f32. weight: (F, 1, C, K). Returns (B, F, 1, L_out) f32.

    `bias` is accepted for API parity with nn.Conv2d but unused: with training-mode
    BatchNorm the per-filter conv bias is removed exactly by the batch-mean subtraction.
    """
    B, C, L = x.shape
    F_, _, _, K = weight.shape
    pad = (kernel_size - 1) // 2
    L_pad = L + 2 * pad
    L_out = L_pad - K + 1

    x_pad = jnp.pad(x, ((0, 0), (0, 0), (pad, pad))).astype(jnp.bfloat16)  # (B, C, L_pad)
    w = jnp.transpose(weight[:, 0], (2, 0, 1)).astype(jnp.bfloat16)        # (K, F, C)
    gb = jnp.stack([gamma, beta], axis=1).astype(jnp.float32)              # (F, 2)

    out = pl.pallas_call(
        _conv_bn_relu_kernel,
        out_shape=jax.ShapeDtypeStruct((B, F_, L_out), jnp.float32),
        in_specs=[
            pl.BlockSpec((B, C, L_pad), lambda: (0, 0, 0)),
            pl.BlockSpec((K, F_, C), lambda: (0, 0, 0)),
            pl.BlockSpec((F_, 2), lambda: (0, 0)),
        ],
        out_specs=pl.BlockSpec((B, F_, L_out), lambda: (0, 0, 0)),
        compiler_params=pltpu.CompilerParams(vmem_limit_bytes=32 * 1024 * 1024),
    )(x_pad, w, gb)

    # PyTorch layout (B, F, H_out=1, L_out): pure reshape, no HBM transpose needed.
    return out.reshape(B, F_, 1, L_out)


if __name__ == "__main__":
    # Module hyperparameters (small, consistent with ConvEncoder.forward).
    sample_length = 16
    n_channels = 4
    n_filters = 8
    kernel_size = 3
    batch = 2

    key = jax.random.PRNGKey(0)
    k_x, k_w, k_b, k_g, k_be = jax.random.split(key, 5)

    # Input: (B, n_channels, sample_length) — what ConvEncoder.forward expects.
    x = jax.random.normal(k_x, (batch, n_channels, sample_length), dtype=jnp.float32)

    # Deterministic parameter init (shapes from nn.Conv2d / nn.BatchNorm2d in __init__).
    weight = 0.1 * jax.random.normal(
        k_w, (n_filters, 1, n_channels, kernel_size), dtype=jnp.float32)
    bias = 0.1 * jax.random.normal(k_b, (n_filters,), dtype=jnp.float32)
    gamma = 1.0 + 0.01 * jax.random.normal(k_g, (n_filters,), dtype=jnp.float32)
    beta = 0.01 * jax.random.normal(k_be, (n_filters,), dtype=jnp.float32)

    out = conv_encoder_forward(x, weight, bias, gamma, beta, kernel_size)
    jax.block_until_ready(out)

    expected_L = sample_length + 2 * ((kernel_size - 1) // 2) - kernel_size + 1
    assert out.shape == (batch, n_filters, 1, expected_L), out.shape
    print("KERNEL_OK")
</pallas_src>

<mosaic_0001>
module attributes {stable_mosaic.version = 11 : i64} {
  func.func @_conv_bn_relu_kernel(%arg0: memref<2x4x18xbf16, #tpu.memory_space<vmem>>, %arg1: memref<3x8x4xbf16, #tpu.memory_space<vmem>>, %arg2: memref<8x2xf32, #tpu.memory_space<vmem>>, %arg3: memref<2x8x16xf32, #tpu.memory_space<vmem>>) attributes {dimension_semantics = [], scalar_prefetch = 0 : i64, scratch_operands = 0 : i64, tpu.core_type = #tpu.core_type<tc>} {
    %cst = arith.constant 0.000000e+00 : f32
    %0 = vector.broadcast %cst : f32 to vector<8x1xf32>
    %cst_0 = arith.constant 0.000000e+00 : f32
    %1 = vector.broadcast %cst_0 : f32 to vector<8x1xf32>
    %c0 = arith.constant 0 : index
    %c0_1 = arith.constant 0 : index
    %c0_2 = arith.constant 0 : index
    %2 = vector.load %arg0[%c0, %c0_1, %c0_2] : memref<2x4x18xbf16, #tpu.memory_space<vmem>>, vector<1x4x18xbf16>
    %3 = vector.shape_cast %2 : vector<1x4x18xbf16> to vector<4x18xbf16>
    %cst_3 = arith.constant 0.000000e+00 : f32
    %4 = vector.broadcast %cst_3 : f32 to vector<8x16xf32>
    %c0_4 = arith.constant 0 : index
    %c0_5 = arith.constant 0 : index
    %c0_6 = arith.constant 0 : index
    %5 = vector.load %arg1[%c0_4, %c0_5, %c0_6] : memref<3x8x4xbf16, #tpu.memory_space<vmem>>, vector<1x8x4xbf16>
    %6 = vector.shape_cast %5 : vector<1x8x4xbf16> to vector<8x4xbf16>
    %7 = vector.extract_strided_slice %3 {offsets = [0, 0], sizes = [4, 16], strides = [1, 1]} : vector<4x18xbf16> to vector<4x16xbf16>
    %cst_7 = arith.constant dense<0.000000e+00> : vector<8x16xf32>
    %8 = tpu.matmul %6, %7, %cst_7 {dimension_numbers = #tpu.dot_dimension_numbers<[1], [0], [0], [1], [0, 0, 1, 1], [], []>} : vector<8x4xbf16>, vector<4x16xbf16>, vector<8x16xf32> -> vector<8x16xf32>
    %9 = arith.addf %4, %8 : vector<8x16xf32>
    %c1 = arith.constant 1 : index
    %c0_8 = arith.constant 0 : index
    %c0_9 = arith.constant 0 : index
    %10 = vector.load %arg1[%c1, %c0_8, %c0_9] : memref<3x8x4xbf16, #tpu.memory_space<vmem>>, vector<1x8x4xbf16>
    %11 = vector.shape_cast %10 : vector<1x8x4xbf16> to vector<8x4xbf16>
    %12 = vector.extract_strided_slice %3 {offsets = [0, 1], sizes = [4, 16], strides = [1, 1]} : vector<4x18xbf16> to vector<4x16xbf16>
    %cst_10 = arith.constant dense<0.000000e+00> : vector<8x16xf32>
    %13 = tpu.matmul %11, %12, %cst_10 {dimension_numbers = #tpu.dot_dimension_numbers<[1], [0], [0], [1], [0, 0, 1, 1], [], []>} : vector<8x4xbf16>, vector<4x16xbf16>, vector<8x16xf32> -> vector<8x16xf32>
    %14 = arith.addf %9, %13 : vector<8x16xf32>
    %c2 = arith.constant 2 : index
    %c0_11 = arith.constant 0 : index
    %c0_12 = arith.constant 0 : index
    %15 = vector.load %arg1[%c2, %c0_11, %c0_12] : memref<3x8x4xbf16, #tpu.memory_space<vmem>>, vector<1x8x4xbf16>
    %16 = vector.shape_cast %15 : vector<1x8x4xbf16> to vector<8x4xbf16>
    %17 = vector.extract_strided_slice %3 {offsets = [0, 2], sizes = [4, 16], strides = [1, 1]} : vector<4x18xbf16> to vector<4x16xbf16>
    %cst_13 = arith.constant dense<0.000000e+00> : vector<8x16xf32>
    %18 = tpu.matmul %16, %17, %cst_13 {dimension_numbers = #tpu.dot_dimension_numbers<[1], [0], [0], [1], [0, 0, 1, 1], [], []>} : vector<8x4xbf16>, vector<4x16xbf16>, vector<8x16xf32> -> vector<8x16xf32>
    %19 = arith.addf %14, %18 : vector<8x16xf32>
    %cst_14 = arith.constant dense<0.000000e+00> : vector<8xf32>
    %20 = vector.multi_reduction <add>, %19, %cst_14 [1] : vector<8x16xf32> to vector<8xf32>
    %21 = vector.shape_cast %20 : vector<8xf32> to vector<8x1xf32>
    %22 = arith.addf %0, %21 : vector<8x1xf32>
    %23 = arith.mulf %19, %19 : vector<8x16xf32>
    %cst_15 = arith.constant dense<0.000000e+00> : vector<8xf32>
    %24 = vector.multi_reduction <add>, %23, %cst_15 [1] : vector<8x16xf32> to vector<8xf32>
    %25 = vector.shape_cast %24 : vector<8xf32> to vector<8x1xf32>
    %26 = arith.addf %1, %25 : vector<8x1xf32>
    %c1_16 = arith.constant 1 : index
    %c0_17 = arith.constant 0 : index
    %c0_18 = arith.constant 0 : index
    %27 = vector.load %arg0[%c1_16, %c0_17, %c0_18] : memref<2x4x18xbf16, #tpu.memory_space<vmem>>, vector<1x4x18xbf16>
    %28 = vector.shape_cast %27 : vector<1x4x18xbf16> to vector<4x18xbf16>
    %cst_19 = arith.constant 0.000000e+00 : f32
    %29 = vector.broadcast %cst_19 : f32 to vector<8x16xf32>
    %c0_20 = arith.constant 0 : index
    %c0_21 = arith.constant 0 : index
    %c0_22 = arith.constant 0 : index
    %30 = vector.load %arg1[%c0_20, %c0_21, %c0_22] : memref<3x8x4xbf16, #tpu.memory_space<vmem>>, vector<1x8x4xbf16>
    %31 = vector.shape_cast %30 : vector<1x8x4xbf16> to vector<8x4xbf16>
    %32 = vector.extract_strided_slice %28 {offsets = [0, 0], sizes = [4, 16], strides = [1, 1]} : vector<4x18xbf16> to vector<4x16xbf16>
    %cst_23 = arith.constant dense<0.000000e+00> : vector<8x16xf32>
    %33 = tpu.matmul %31, %32, %cst_23 {dimension_numbers = #tpu.dot_dimension_numbers<[1], [0], [0], [1], [0, 0, 1, 1], [], []>} : vector<8x4xbf16>, vector<4x16xbf16>, vector<8x16xf32> -> vector<8x16xf32>
    %34 = arith.addf %29, %33 : vector<8x16xf32>
    %c1_24 = arith.constant 1 : index
    %c0_25 = arith.constant 0 : index
    %c0_26 = arith.constant 0 : index
    %35 = vector.load %arg1[%c1_24, %c0_25, %c0_26] : memref<3x8x4xbf16, #tpu.memory_space<vmem>>, vector<1x8x4xbf16>
    %36 = vector.shape_cast %35 : vector<1x8x4xbf16> to vector<8x4xbf16>
    %37 = vector.extract_strided_slice %28 {offsets = [0, 1], sizes = [4, 16], strides = [1, 1]} : vector<4x18xbf16> to vector<4x16xbf16>
    %cst_27 = arith.constant dense<0.000000e+00> : vector<8x16xf32>
    %38 = tpu.matmul %36, %37, %cst_27 {dimension_numbers = #tpu.dot_dimension_numbers<[1], [0], [0], [1], [0, 0, 1, 1], [], []>} : vector<8x4xbf16>, vector<4x16xbf16>, vector<8x16xf32> -> vector<8x16xf32>
    %39 = arith.addf %34, %38 : vector<8x16xf32>
    %c2_28 = arith.constant 2 : index
    %c0_29 = arith.constant 0 : index
    %c0_30 = arith.constant 0 : index
    %40 = vector.load %arg1[%c2_28, %c0_29, %c0_30] : memref<3x8x4xbf16, #tpu.memory_space<vmem>>, vector<1x8x4xbf16>
    %41 = vector.shape_cast %40 : vector<1x8x4xbf16> to vector<8x4xbf16>
    %42 = vector.extract_strided_slice %28 {offsets = [0, 2], sizes = [4, 16], strides = [1, 1]} : vector<4x18xbf16> to vector<4x16xbf16>
    %cst_31 = arith.constant dense<0.000000e+00> : vector<8x16xf32>
    %43 = tpu.matmul %41, %42, %cst_31 {dimension_numbers = #tpu.dot_dimension_numbers<[1], [0], [0], [1], [0, 0, 1, 1], [], []>} : vector<8x4xbf16>, vector<4x16xbf16>, vector<8x16xf32> -> vector<8x16xf32>
    %44 = arith.addf %39, %43 : vector<8x16xf32>
    %cst_32 = arith.constant dense<0.000000e+00> : vector<8xf32>
    %45 = vector.multi_reduction <add>, %44, %cst_32 [1] : vector<8x16xf32> to vector<8xf32>
    %46 = vector.shape_cast %45 : vector<8xf32> to vector<8x1xf32>
    %47 = arith.addf %22, %46 : vector<8x1xf32>
    %48 = arith.mulf %44, %44 : vector<8x16xf32>
    %cst_33 = arith.constant dense<0.000000e+00> : vector<8xf32>
    %49 = vector.multi_reduction <add>, %48, %cst_33 [1] : vector<8x16xf32> to vector<8xf32>
    %50 = vector.shape_cast %49 : vector<8xf32> to vector<8x1xf32>
    %51 = arith.addf %26, %50 : vector<8x1xf32>
    %cst_34 = arith.constant 3.125000e-02 : f32
    %52 = vector.broadcast %cst_34 : f32 to vector<8x1xf32>
    %53 = arith.mulf %47, %52 : vector<8x1xf32>
    %cst_35 = arith.constant 3.125000e-02 : f32
    %54 = vector.broadcast %cst_35 : f32 to vector<8x1xf32>
    %55 = arith.mulf %51, %54 : vector<8x1xf32>
    %56 = arith.mulf %53, %53 : vector<8x1xf32>
    %57 = arith.subf %55, %56 : vector<8x1xf32>
    %c0_36 = arith.constant 0 : index
    %c0_37 = arith.constant 0 : index
    %58 = vector.load %arg2[%c0_36, %c0_37] : memref<8x2xf32, #tpu.memory_space<vmem>>, vector<8x1xf32>
    %c0_38 = arith.constant 0 : index
    %c1_39 = arith.constant 1 : index
    %59 = vector.load %arg2[%c0_38, %c1_39] : memref<8x2xf32, #tpu.memory_space<vmem>>, vector<8x1xf32>
    %cst_40 = arith.constant 9.99999974E-6 : f32
    %60 = vector.broadcast %cst_40 : f32 to vector<8x1xf32>
    %61 = arith.addf %57, %60 : vector<8x1xf32>
    %62 = math.rsqrt %61 : vector<8x1xf32>
    %63 = arith.mulf %58, %62 : vector<8x1xf32>
    %64 = arith.mulf %53, %63 : vector<8x1xf32>
    %65 = arith.subf %59, %64 : vector<8x1xf32>
    %66 = vector.broadcast %63 : vector<8x1xf32> to vector<8x16xf32>
    %67 = arith.mulf %19, %66 : vector<8x16xf32>
    %68 = vector.broadcast %65 : vector<8x1xf32> to vector<8x16xf32>
    %69 = arith.addf %67, %68 : vector<8x16xf32>
    %cst_41 = arith.constant 0.000000e+00 : f32
    %70 = vector.broadcast %cst_41 : f32 to vector<8x16xf32>
    %71 = arith.maximumf %69, %70 : vector<8x16xf32>
    %c0_42 = arith.constant 0 : index
    %c0_43 = arith.constant 0 : index
    %c0_44 = arith.constant 0 : index
    %72 = vector.load %arg3[%c0_42, %c0_43, %c0_44] : memref<2x8x16xf32, #tpu.memory_space<vmem>>, vector<1x8x16xf32>
    %73 = vector.shape_cast %72 : vector<1x8x16xf32> to vector<8x16xf32>
    %74 = vector.shape_cast %71 : vector<8x16xf32> to vector<1x8x16xf32>
    tpu.vector_store %arg3[%c0_42, %c0_43, %c0_44], %74 {strides = array<i32>} : memref<2x8x16xf32, #tpu.memory_space<vmem>>, vector<1x8x16xf32>,
    %75 = vector.broadcast %63 : vector<8x1xf32> to vector<8x16xf32>
    %76 = arith.mulf %44, %75 : vector<8x16xf32>
    %77 = vector.broadcast %65 : vector<8x1xf32> to vector<8x16xf32>
    %78 = arith.addf %76, %77 : vector<8x16xf32>
    %cst_45 = arith.constant 0.000000e+00 : f32
    %79 = vector.broadcast %cst_45 : f32 to vector<8x16xf32>
    %80 = arith.maximumf %78, %79 : vector<8x16xf32>
    %c1_46 = arith.constant 1 : index
    %c0_47 = arith.constant 0 : index
    %c0_48 = arith.constant 0 : index
    %81 = vector.load %arg3[%c1_46, %c0_47, %c0_48] : memref<2x8x16xf32, #tpu.memory_space<vmem>>, vector<1x8x16xf32>
    %82 = vector.shape_cast %81 : vector<1x8x16xf32> to vector<8x16xf32>
    %83 = vector.shape_cast %80 : vector<8x16xf32> to vector<1x8x16xf32>
    tpu.vector_store %arg3[%c1_46, %c0_47, %c0_48], %83 {strides = array<i32>} : memref<2x8x16xf32, #tpu.memory_space<vmem>>, vector<1x8x16xf32>,
    return
  }
}

</mosaic_0001>

<bundles_post_ra>
// kernel: tpu_custom_call.1
= control target key start
LH: loop header
LB: loop body
LE: loop exit
PB: predicated region body
PF: predicated region fallthrough
CT: control target
= control target key end

     0   :  { %v24_v0 = vlaneseq  ;;  %v500_v1 = vmov 1983009808   ;;  %v501_v4 = vmov 0.0   ;;  %vm502_vm0 = vmmov 0   ;;  %s585_s0 = inlined_call_operand.vmem [shape: bf16[2,4,18], index: 0, kind: input, shape index: {}]   ;;  %s586_s1 = inlined_call_operand.vmem [shape: bf16[3,8,4], index: 1, kind: input, shape index: {}]   ;;  %s587_s2 = inlined_call_operand.vmem [shape: f32[8,2], index: 2, kind: input, shape index: {}]   ;;  %s588_s3 = inlined_call_operand.hbm [shape: f32[2,8,16], index: 3, kind: output, shape index: {}]  }
   0x1   :  { %v22_v2 = vunpack.c.l.s4 %v500_v1  ;;  %408 = vmatprep.subr.bf16.mxu0 %v501_v4  ;;  %410 = vmatprep.mubr.msk.bf16.mxu0 %vm502_vm0, %v501_v4 }
   0x2   :  { %v25_v3 = vshrl.u32 %v24_v0, 7  ;;  %426 = vmatprep.subr.bf16.mxu1 %v501_v4  ;;  %428 = vmatprep.mubr.msk.bf16.mxu1 %vm502_vm0, %v501_v4 }
   0x3   :  { %v23_v5 = vunpack.c.0.s8 %v22_v2 }
   0x4   :  { %8 = vsyncpa [#allocation3], 0  ;;  %v16_v6 = vld [vmem:[%s585_s0] sm:$0x3]  ;;  %v392_v8 = vld [vmem:[%s585_s0 + $0x2] sm:$0x3] }
   0x5   :  { %v26_v7 = vsub.s32 %v23_v5, %v25_v3  ;;  %s503_s16 = smov 127   ;;  %s504_s17 = smov 126   ;;  %vm34_vm1 = vcmask 1041408   ;;  %v387_v13 = vld [vmem:[%s586_s1 + $0x4] sm:$0xf]  ;;  %vm30_vm2 = vcmask 31744  }
   0x6   :  { %v82_v14 = vsel %vm34_vm1, %v16_v6, 0  ;;  %v241_v17 = vsel %vm34_vm1, %v392_v8, 0  ;;  %v17_v19 = vld [vmem:[%s586_s1] sm:$0xf]  ;;  %v390_v23 = vld [vmem:[%s586_s1 + $0x8] sm:$0xf] }
   0x7   :  { %v27_v9 = vrot.slane %v16_v6, %v26_v7  ;;  %v194_v10 = vrot.slane %v392_v8, %v26_v7  ;;  %vm175_vm3 = vcmask 130048   ;;  %v505_v38 = vmov 0   ;;  %v342_v51 = vld [vmem:[%s587_s2] sm:$0xff]  ;;  %s507_s24 = smov 1   ;;  %s508_s25 = smov [#allocation2]  }
   0x8   :  { %471 = vset.pattern.permute.xlu0 %v505_v38  ;;  %v506_v50 = vmov 1   ;;  %s376_s26 = sshll.u32 %s508_s25, 4  ;;  %s377_s26 = int_to_ptr.vmem [resolvable:$true] %s376_s26 }
   0x9   :  { %28 = vrot.lane.b32.xlu0 %v27_v9, %s503_s16  ;;  %126 = vrot.lane.b32.xlu1 %v27_v9, %s504_s17  ;;  %s476_s2 = scalar_lea.vmem %s377_s26, 256  ;;  %p481_p1 = scmp.lt.s32.totalorder %s377_s26, %s377_s26 }
   0xa   :  { %472 = vset.pattern.permute.xlu1 %v506_v50  ;;  %p477_p0 = scmp.ne.s32.totalorder %s377_s26, %s476_s2  ;;  %p482_p2 = scmp.lt.s32.totalorder %s476_s2, %s476_s2 }
   0xc   :  { %p483_p3 = por %p482_p2, %p481_p1 }
   0xd   :  { %195 = vrot.lane.b32.xlu0 %v194_v10, %s503_s16  ;;  %283 = vrot.lane.b32.xlu1 %v194_v10, %s504_s17 }
   0xe   :  { %p484_p4 = pnand %p483_p3, %p477_p0 }
  0x7b   :  { %v29_v11 = vpop.permute.xlu0 %28  ;;  %v127_v18 = vpop.permute.xlu1 %126 }
  0x7c   :  { %v36_v12 = vsel %vm34_vm1, %v29_v11, 0  ;;  %v132_v20 = vsel %vm34_vm1, %v127_v18, 0 }
  0x7d   :  { %409 = vmatpush3.bf16.msra.mxu0 %v36_v12 }
  0x7e   :  { %414 = vmatprep.subr.bf16.mxu0 %v501_v4 }
  0x7f   :  { %v196_v15 = vpop.permute.xlu0 %195  ;;  %v284_v21 = vpop.permute.xlu1 %283 }
  0x80   :  { %411 = vmatmul.mubr.msk.bf16.vlgmr.msra.gmra.mrb[0].mxu0 %vm30_vm2, %v387_v13  ;;  %v198_v16 = vsel %vm34_vm1, %v196_v15, 0  ;;  %v286_v22 = vsel %vm34_vm1, %v284_v21, 0 }
  0x81   :  { %415 = vmatpush3.bf16.msra.mxu0 %v82_v14  ;;  %427 = vmatpush3.bf16.msra.mxu1 %v198_v16 }
  0x82   :  { %432 = vmatprep.subr.bf16.mxu1 %v501_v4  ;;  %416 = vmatprep.mubr.msk.bf16.mxu0 %vm502_vm0, %v501_v4 }
  0x83   :  { %420 = vmatprep.subr.bf16.mxu0 %v501_v4 }
  0x84   :  { %429 = vmatmul.mubr.msk.bf16.vlgmr.msra.gmra.mrb[0].mxu1 %vm30_vm2, %v387_v13 }
  0x85   :  { %433 = vmatpush3.bf16.msra.mxu1 %v241_v17  ;;  %434 = vmatprep.mubr.msk.bf16.mxu1 %vm502_vm0, %v501_v4 }
  0x86   :  { %438 = vmatprep.subr.bf16.mxu1 %v501_v4 }
  0x8c   :  { %417 = vmatmul.mubr.msk.bf16.vlgmr.msra.gmra.mrb[0].mxu0 %vm30_vm2, %v17_v19 }
  0x8d   :  { %421 = vmatpush3.bf16.msra.mxu0 %v132_v20  ;;  %422 = vmatprep.mubr.msk.bf16.mxu0 %vm502_vm0, %v501_v4 }
  0x90   :  { %435 = vmatmul.mubr.msk.bf16.vlgmr.msra.gmra.mrb[0].mxu1 %vm30_vm2, %v17_v19 }
  0x91   :  { %439 = vmatpush3.bf16.msra.mxu1 %v286_v22  ;;  %440 = vmatprep.mubr.msk.bf16.mxu1 %vm502_vm0, %v501_v4 }
  0x98   :  { %423 = vmatmul.mubr.msk.bf16.vlgmr.msra.gmra.mrb[0].mxu0 %vm30_vm2, %v390_v23 }
  0x9c   :  { %441 = vmatmul.mubr.msk.bf16.vlgmr.msra.gmra.mrb[0].mxu1 %vm30_vm2, %v390_v23 }
 0x16b   :  { %v168_v24 = vpop.f32.mrb[0].mxu0 }
 0x16c   :  { %v424_v25 = vpop.f32.mrb[1].mxu0  ;;  %v176_v26 = vsel %vm175_vm3, %v168_v24, 0.0  ;;  %v180_v27 = vmul.f32 %v168_v24, %v168_v24 }
 0x16d   :  { %177 = vadd.xlane.f32.xlu0 %v176_v26  ;;  %v171_v28 = vpop.f32.mrb[2].mxu0 }
 0x16e   :  { %v425_v29 = vpop.f32.mrb[3].mxu0  ;;  %v181_v32 = vsel %vm175_vm3, %v180_v27, 0.0 }
 0x16f   :  { %v322_v30 = vpop.f32.mrb[0].mxu1 }
 0x170   :  { %v442_v31 = vpop.f32.mrb[1].mxu1  ;;  %v329_v33 = vsel %vm175_vm3, %v322_v30, 0.0  ;;  %v333_v34 = vmul.f32 %v322_v30, %v322_v30 }
 0x171   :  { %182 = vadd.xlane.f32.xlu0 %v181_v32  ;;  %330 = vadd.xlane.f32.xlu1 %v329_v33  ;;  %v325_v35 = vpop.f32.mrb[2].mxu1 }
 0x172   :  { %v443_v36 = vpop.f32.mrb[3].mxu1  ;;  %v334_v37 = vsel %vm175_vm3, %v333_v34, 0.0 }
 0x175   :  { %335 = vadd.xlane.f32.xlu0 %v334_v37 }
 0x1fa   :  { %v178_v39 = vpop.xlane.xlu0 %177 }
 0x1fe   :  { %v331_v40 = vpop.xlane.xlu1 %330  ;;  %v183_v41 = vpop.xlane.xlu0 %182 }
 0x1ff   :  { %v332_v42 = vadd.f32 %v331_v40, %v178_v39 }
 0x201   :  { %v338_v43 = vmul.f32 0.03125, %v332_v42 }
 0x202   :  { %v336_v44 = vpop.xlane.xlu0 %335 }
 0x203   :  { %v337_v45 = vadd.f32 %v336_v44, %v183_v41  ;;  %v340_v46 = vmul.f32 %v338_v43, %v338_v43 }
 0x205   :  { %v339_v47 = vmul.f32 0.03125, %v337_v45 }
 0x207   :  { %v341_v48 = vsub.f32 %v339_v47, %v340_v46 }
 0x209   :  { %v343_v49 = vadd.f32 1e-05, %v341_v48 }
 0x20b   :  { %474 = vrsqrt.f32 %v343_v49 }
 0x215   :  { %v475_v52 = vpop.eup %474 }
 0x216   :  { %v345_v53 = vmul.f32 %v475_v52, %v342_v51 }
 0x218   :  { %354 = vperm.xlu0 %471, %v345_v53   ;;  %v346_v54 = vmul.f32 %v345_v53, %v338_v43 }
 0x21a   :  { %348 = vrot.lane.b32.xlu1 %v346_v54, %s507_s24 }
 0x21c   :  { %473 = vset.pattern.permute.xlu0 %v506_v50 }
 0x28c   :  { %v349_v55 = vpop.permute.xlu1 %348 }
 0x28d   :  { %v351_v56 = vsub.f32 %v342_v51, %v349_v55 }
 0x28f   :  { %360 = vperm.xlu1 %472, %v351_v56  }
 0x297   :  { %v355_v57 = vpop.permute.xlu0 %354 }
 0x298   :  { %v357_v58 = vmul.f32 %v355_v57, %v168_v24  ;;  %v366_v59 = vmul.f32 %v355_v57, %v322_v30 }
 0x30e   :  { %v361_v60 = vpop.permute.xlu1 %360 }
 0x30f   :  { %v363_v61 = vadd.f32 %v361_v60, %v357_v58  ;;  %v367_v62 = vadd.f32 %v366_v59, %v361_v60 }
 0x311   :  { %v364_v63 = vmax.f32 %v363_v61, 0.0  ;;  %v368_v0 = vmax.f32 %v367_v62, 0.0 }
 0x313   :  { %365 = vst.msk [vmem:[#allocation2] sm:$0xff] %vm175_vm3, %v364_v63  ;;  %370 = vst.msk [vmem:[#allocation2 + $0x8] sm:$0xff] %vm175_vm3, %v368_v0 }
 0x314   :  { %487 = shalt.err (!%p484_p4)
}
 0x315   :  { %s488_s29 = scalar_lea.hbm %s588_s3, 256 }
 0x316   :  { %p489_p5 = scmp.ne.s32.totalorder %s588_s3, %s488_s29  ;;  %p492_p6 = scmp.lt.u32.totalorder %s488_s29, %s588_s3 }
 0x318   :  { %p494_p7 = pnand %p492_p6, %p489_p5 }
 0x31a   :  { %497 = shalt.err (!%p494_p7)
}
 0x31b   :  { %s509_s7 = smov 128   ;;  %s510_s8 = smov 8  }
 0x31c   :  { %382 = dma.vmem_to_hbm [thread:$0]  %s377_s26, 256, %s588_s3, [#allocation3], %s509_s7, %s509_s7, %s510_s8  }
 0x31d   :  { %498 = dma.done.wait [#allocation3], 256  }
 0x31e   :  { %499 = vsyncadd [#allocation3], 4294967040 }
 0x31f   :  { %386 = vsyncpa [#allocation3], 1 }

</bundles_post_ra>
